<compile_context>
chip_gen: v6e
topology: v6e:2x2x1
jax: 0.10.0
libtpu: 0.0.40
codegen_flags: <defaults>
</compile_context>

<pallas_src>
import functools

import jax
import jax.numpy as jnp
from jax import lax
from jax.experimental import pallas as pl
from jax.experimental.pallas import tpu as pltpu


def _round_up(x, m):
    return ((x + m - 1) // m) * m


# --------------------------------------------------------------------------
# Pallas kernels
# --------------------------------------------------------------------------
def _vl_kernel_single_k(d_ref, w_ref, o_ref):
    """Single reduction step: o = d @ w.T (contraction on last dim of both)."""
    o_ref[...] = lax.dot_general(
        d_ref[...], w_ref[...],
        dimension_numbers=(((1,), (1,)), ((), ())),
        preferred_element_type=jnp.float32).astype(o_ref.dtype)


def _vl_kernel_acc_out(d_ref, w_ref, o_ref):
    """Tiled K, fp32 output: accumulate directly into the resident out block."""
    @pl.when(pl.program_id(2) == 0)
    def _():
        o_ref[...] = jnp.zeros_like(o_ref)

    o_ref[...] += lax.dot_general(
        d_ref[...], w_ref[...],
        dimension_numbers=(((1,), (1,)), ((), ())),
        preferred_element_type=jnp.float32)


def _vl_kernel_acc_scratch(d_ref, w_ref, o_ref, acc_ref):
    """Tiled K, non-f32 output: fp32 VMEM accumulator, cast on finalize."""
    @pl.when(pl.program_id(2) == 0)
    def _():
        acc_ref[...] = jnp.zeros_like(acc_ref)

    acc_ref[...] += lax.dot_general(
        d_ref[...], w_ref[...],
        dimension_numbers=(((1,), (1,)), ((), ())),
        preferred_element_type=jnp.float32)

    @pl.when(pl.program_id(2) == pl.num_programs(2) - 1)
    def _():
        o_ref[...] = acc_ref[...].astype(o_ref.dtype)


# --------------------------------------------------------------------------
# Wrapper: VarLinear.matmul semantics (data @ var.T), tiled pallas_call
# --------------------------------------------------------------------------
def var_linear_matmul(data, var, *, compute_dtype=jnp.bfloat16,
                      out_dtype=jnp.float32,
                      tm_target=512, tn_target=2048, tk_target=1024,
                      vmem_budget_bytes=28 * 1024 * 1024):
    if data.ndim <= 1:
        raise ValueError("data should be at least 2 dimensional")
    if data.shape[-1] != var.shape[-1]:
        raise ValueError("data last dim must match var last dim")

    V, E = var.shape
    lead = data.shape[:-1]
    M = 1
    for d in lead:
        M *= int(d)

    in_isz = jnp.dtype(compute_dtype).itemsize
    out_isz = jnp.dtype(out_dtype).itemsize
    needs_scratch_acc = jnp.dtype(out_dtype) != jnp.float32

    def footprint(tm, tn, tk):
        # Double-buffered bf16 input tiles + double-buffered output tile
        # (+ fp32 scratch accumulator only for non-f32 output).
        fp = 2 * (tm * tk + tn * tk) * in_isz + 2 * tm * tn * out_isz
        if needs_scratch_acc:
            fp += tm * tn * 4
        return fp

    # Tile selection.  A block equal to a full array dim is always legal;
    # otherwise tn must be a multiple of 128 (lane dim of the output / var
    # sublane) and tm a multiple of 8.  Defaults keep the footprint well under
    # the 32 MiB scoped-VMEM default on every generation (v7x-safe).
    tm = M if M <= tm_target else tm_target
    tn = V if V <= tn_target else tn_target
    # Prefer a single reduction step: no E padding, no accumulator traffic.
    tk = E
    if footprint(tm, tn, tk) > vmem_budget_bytes and E > tk_target:
        tk = tk_target
    # Shrink oversized (user-supplied) targets back under the VMEM budget.
    while footprint(tm, tn, tk) > vmem_budget_bytes and tn >= 512 and tn % 256 == 0:
        tn //= 2
    while footprint(tm, tn, tk) > vmem_budget_bytes and tm >= 256 and tm % 16 == 0:
        tm //= 2

    d2 = data.reshape(M, E).astype(compute_dtype)
    w2 = var.astype(compute_dtype)

    # Zero-pad ONLY the contraction dim, and only when it is tiled: a ragged
    # K tail would feed garbage into the accumulation.  Ragged M / V edges are
    # handled by Pallas edge-block masking on the output store (no HBM pad, no
    # output slice).
    if tk < E:
        Ep = _round_up(E, tk)
        d2 = jnp.pad(d2, ((0, 0), (0, Ep - E)))
        w2 = jnp.pad(w2, ((0, 0), (0, Ep - E)))
    else:
        Ep = E

    grid_n = pl.cdiv(V, tn)   # vocab axis: largest parallel axis, outermost
    grid_m = pl.cdiv(M, tm)
    grid_k = Ep // tk
    grid = (grid_n, grid_m, grid_k)

    if grid_k == 1:
        kernel, scratch = _vl_kernel_single_k, []
    elif not needs_scratch_acc:
        kernel, scratch = _vl_kernel_acc_out, []
    else:
        kernel, scratch = _vl_kernel_acc_scratch, [pltpu.VMEM((tm, tn), jnp.float32)]

    cost = pl.CostEstimate(
        flops=2 * M * V * Ep,
        transcendentals=0,
        # var streams through once; the (small) data slab is re-read per V tile.
        bytes_accessed=grid_n * M * Ep * in_isz + V * Ep * in_isz + M * V * out_isz)

    out = pl.pallas_call(
        kernel,
        out_shape=jax.ShapeDtypeStruct((M, V), out_dtype),
        grid_spec=pltpu.PrefetchScalarGridSpec(
            num_scalar_prefetch=0,
            grid=grid,
            in_specs=[
                pl.BlockSpec((tm, tk), lambda j, i, k: (i, k)),   # data rows
                pl.BlockSpec((tn, tk), lambda j, i, k: (j, k)),   # var rows
            ],
            out_specs=pl.BlockSpec((tm, tn), lambda j, i, k: (i, j)),
            scratch_shapes=scratch,
        ),
        compiler_params=pltpu.CompilerParams(
            dimension_semantics=("parallel", "parallel", "arbitrary")),
        cost_estimate=cost,
    )(d2, w2)

    return out.reshape(*lead, V)


# --------------------------------------------------------------------------
# Minimal deterministic word_representer stand-in (plain JAX glue).
# --------------------------------------------------------------------------
# TODO(synk): the real word_representer (char-composition RNN/CNN) is defined
# elsewhere in the original codebase; a cheap deterministic stand-in is used.
def make_word_representer_params(key, vocab, n_chars, max_spelling, char_dim, embed_dim):
    k1, k2, k3, k4 = jax.random.split(key, 4)
    return {
        "spelling": jax.random.randint(k1, (vocab, max_spelling), 0, n_chars,
                                       dtype=jnp.int32),
        "char_emb": jax.random.uniform(k2, (n_chars, char_dim), jnp.float32, -0.1, 0.1),
        "proj_w": jax.random.uniform(k3, (char_dim, embed_dim), jnp.float32, -0.3, 0.3),
        "proj_b": jax.random.uniform(k4, (embed_dim,), jnp.float32, -0.05, 0.05),
    }


def word_representer(p):
    ch = p["char_emb"][p["spelling"]]            # [V, C, char_dim]
    pooled = jnp.mean(ch, axis=1)                # [V, char_dim]
    return jnp.tanh(pooled @ p["proj_w"] + p["proj_b"])   # [V, E]


def var_linear_forward(data, wr_params):
    """Mirrors VarLinear.forward: var = word_representer(); return data @ var.T."""
    var = word_representer(wr_params)
    return var_linear_matmul(data, var)


# --------------------------------------------------------------------------
if __name__ == "__main__":
    key = jax.random.PRNGKey(0)

    def ref_matmul(d, w):
        # Plain-JAX reference with the same bf16 input rounding and fp32 accumulation.
        return jnp.einsum(
            "...e,ve->...v",
            d.astype(jnp.bfloat16).astype(jnp.float32),
            w.astype(jnp.bfloat16).astype(jnp.float32),
            precision=lax.Precision.HIGHEST)

    def check(out, ref, tol, name):
        err = float(jnp.max(jnp.abs(out.astype(jnp.float32) - ref)))
        scale = float(jnp.max(jnp.abs(ref))) + 1e-6
        assert err / scale < tol, f"{name}: max relative error {err / scale}"

    # ---- 1) Nominal VarLinear forward (single-K-step fast path) ----------
    B, S, E = 2, 8, 32
    V = 512
    n_chars, max_spelling, char_dim = 40, 12, 24
    k_wr, k_data, k_rest = jax.random.split(key, 3)
    wr_params = make_word_representer_params(k_wr, V, n_chars, max_spelling,
                                             char_dim, E)
    data = jax.random.uniform(k_data, (B, S, E), jnp.float32, -1.0, 1.0)

    fwd = jax.jit(var_linear_forward)
    out = fwd(data, wr_params)
    jax.block_until_ready(out)
    var = word_representer(wr_params)
    assert out.shape == (B, S, V), out.shape
    check(out, ref_matmul(data, var), 2e-3, "nominal")

    # ---- 2) Ragged M/V + forced multi-K-step path (E gets zero-padded) ---
    kd2, kv2 = jax.random.split(k_rest)
    data2 = jax.random.uniform(kd2, (2, 5, 160), jnp.float32, -1.0, 1.0)   # M = 10
    var2 = jax.random.uniform(kv2, (300, 160), jnp.float32, -1.0, 1.0)     # V = 300
    out2 = jax.jit(functools.partial(var_linear_matmul, tk_target=128,
                                     vmem_budget_bytes=64 * 1024))(data2, var2)
    jax.block_until_ready(out2)
    assert out2.shape == (2, 5, 300), out2.shape
    check(out2, ref_matmul(data2, var2), 2e-3, "ragged/multi-k")

    # ---- 3) Optional bf16 output (fp32 MXU accumulation, cast at store) --
    out3 = jax.jit(functools.partial(var_linear_matmul,
                                     out_dtype=jnp.bfloat16))(data, var)
    jax.block_until_ready(out3)
    assert out3.shape == (B, S, V), out3.shape
    check(out3, ref_matmul(data, var), 1e-2, "bf16-out")

    print("KERNEL_OK")
</pallas_src>

<mosaic_0001>
module attributes {stable_mosaic.version = 11 : i64} {
  func.func @_vl_kernel_single_k(%arg0: i32, %arg1: i32, %arg2: i32, %arg3: memref<16x32xbf16, #tpu.memory_space<vmem>>, %arg4: memref<512x32xbf16, #tpu.memory_space<vmem>>, %arg5: memref<16x512xf32, #tpu.memory_space<vmem>>) attributes {dimension_semantics = [#tpu.dimension_semantics<parallel>, #tpu.dimension_semantics<parallel>, #tpu.dimension_semantics<arbitrary>], iteration_bounds = array<i64: 1, 1, 1>, scalar_prefetch = 0 : i64, scratch_operands = 0 : i64, tpu.core_type = #tpu.core_type<tc>, window_params = [{transform_indices = @transform_0, window_bounds = array<i64: 16, 32>}, {transform_indices = @transform_1, window_bounds = array<i64: 512, 32>}, {transform_indices = @transform_2, window_bounds = array<i64: 16, 512>}]} {
    %c0 = arith.constant 0 : index
    %c0_0 = arith.constant 0 : index
    %0 = vector.load %arg3[%c0, %c0_0] : memref<16x32xbf16, #tpu.memory_space<vmem>>, vector<16x32xbf16>
    %c0_1 = arith.constant 0 : index
    %c0_2 = arith.constant 0 : index
    %1 = vector.load %arg4[%c0_1, %c0_2] : memref<512x32xbf16, #tpu.memory_space<vmem>>, vector<512x32xbf16>
    %cst = arith.constant dense<0.000000e+00> : vector<16x512xf32>
    %2 = tpu.matmul %0, %1, %cst {dimension_numbers = #tpu.dot_dimension_numbers<[1], [1], [0], [0], [0, 0, 1, 0], [], []>} : vector<16x32xbf16>, vector<512x32xbf16>, vector<16x512xf32> -> vector<16x512xf32>
    %c0_3 = arith.constant 0 : index
    %c0_4 = arith.constant 0 : index
    %3 = vector.load %arg5[%c0_3, %c0_4] : memref<16x512xf32, #tpu.memory_space<vmem>>, vector<16x512xf32>
    tpu.vector_store %arg5[%c0_3, %c0_4], %2 {strides = array<i32>} : memref<16x512xf32, #tpu.memory_space<vmem>>, vector<16x512xf32>,
    return
  }
  func.func @transform_0(%arg0: i32, %arg1: i32, %arg2: i32) -> (i32, i32) {
    %c0_i32 = arith.constant 0 : i32
    return %arg1, %arg2 : i32, i32
  }
  func.func @transform_1(%arg0: i32, %arg1: i32, %arg2: i32) -> (i32, i32) {
    %c0_i32 = arith.constant 0 : i32
    return %arg0, %arg2 : i32, i32
  }
  func.func @transform_2(%arg0: i32, %arg1: i32, %arg2: i32) -> (i32, i32) {
    %c0_i32 = arith.constant 0 : i32
    return %arg1, %arg0 : i32, i32
  }
}

</mosaic_0001>

<bundles_post_ra>
// kernel: var_linear_forward.1
= control target key start
LH: loop header
LB: loop body
LE: loop exit
PB: predicated region body
PF: predicated region fallthrough
CT: control target
= control target key end

     0   :  { %vm244_vm0 = vcmask 261120   ;;  %s755_s0 = inlined_call_operand.vmem [shape: bf16[16,32], index: 0, kind: input, shape index: {}]   ;;  %s756_s1 = inlined_call_operand.vmem [shape: bf16[512,32], index: 1, kind: input, shape index: {}]   ;;  %s757_s2 = inlined_call_operand.hbm [shape: f32[16,512], index: 2, kind: output, shape index: {}]  }
   0x1   :  { %v544_v0 = vld [vmem:[%s756_s1 + $0x78] sm:$0xff]   ;;  %v548_v5 = vld [vmem:[%s756_s1 + $0x70] sm:$0xff]   ;;  %v552_v11 = vld [vmem:[%s756_s1 + $0x68] sm:$0xff]  }
   0x2   :  { %v545_v1 = vld [vmem:[%s756_s1 + $0xf8] sm:$0xff]   ;;  %525 = vmatprep.subr.msk.bf16.mxu0 %vm244_vm0, %v544_v0  ;;  %v549_v7 = vld [vmem:[%s756_s1 + $0xf0] sm:$0xff]   ;;  %v553_v13 = vld [vmem:[%s756_s1 + $0xe8] sm:$0xff]  }
   0x3   :  { %v546_v2 = vld [vmem:[%s756_s1 + $0x38] sm:$0xff]   ;;  %533 = vmatprep.subr.msk.bf16.mxu1 %vm244_vm0, %v545_v1  ;;  %v550_v8 = vld [vmem:[%s756_s1 + $0x30] sm:$0xff]   ;;  %v554_v14 = vld [vmem:[%s756_s1 + $0x28] sm:$0xff]  }
   0x4   :  { %v547_v3 = vld [vmem:[%s756_s1 + $0xb8] sm:$0xff]   ;;  %v270_v4 = vsel %vm244_vm0, %v546_v2, 0  ;;  %v551_v9 = vld [vmem:[%s756_s1 + $0xb0] sm:$0xff]   ;;  %v267_v10 = vsel %vm244_vm0, %v550_v8, 0  ;;  %v555_v15 = vld [vmem:[%s756_s1 + $0xa8] sm:$0xff]   ;;  %v264_v16 = vsel %vm244_vm0, %v554_v14, 0 }
   0x5   :  { %490 = vmatpush3.bf16.xpose.msra.mxu0 %v270_v4  ;;  %v318_v6 = vsel %vm244_vm0, %v547_v3, 0  ;;  %v315_v12 = vsel %vm244_vm0, %v551_v9, 0  ;;  %v556_v17 = vld [vmem:[%s756_s1 + $0x60] sm:$0xff]   ;;  %v312_v18 = vsel %vm244_vm0, %v555_v15, 0  ;;  %v560_v23 = vld [vmem:[%s756_s1 + $0x58] sm:$0xff]  }
   0x6   :  { %508 = vmatpush3.bf16.xpose.msra.mxu1 %v318_v6  ;;  %526 = vmatprep.subr.msk.bf16.mxu0 %vm244_vm0, %v548_v5  ;;  %v557_v19 = vld [vmem:[%s756_s1 + $0xe0] sm:$0xff]   ;;  %v561_v25 = vld [vmem:[%s756_s1 + $0xd8] sm:$0xff]  }
   0x7   :  { %534 = vmatprep.subr.msk.bf16.mxu1 %vm244_vm0, %v549_v7  ;;  %v558_v20 = vld [vmem:[%s756_s1 + $0x20] sm:$0xff]   ;;  %v562_v26 = vld [vmem:[%s756_s1 + $0x18] sm:$0xff]  }
   0x8   :  { %v559_v21 = vld [vmem:[%s756_s1 + $0xa0] sm:$0xff]   ;;  %v261_v22 = vsel %vm244_vm0, %v558_v20, 0  ;;  %v563_v27 = vld [vmem:[%s756_s1 + $0x98] sm:$0xff]  }
   0x9   :  { %v309_v24 = vsel %vm244_vm0, %v559_v21, 0  ;;  %v576_v28 = vld [vmem:[%s755_s0] sm:$0xff]  }
   0xd   :  { %492 = vmatpush3.bf16.xpose.msra.mxu0 %v267_v10 }
   0xe   :  { %510 = vmatpush3.bf16.xpose.msra.mxu1 %v315_v12  ;;  %527 = vmatprep.subr.msk.bf16.mxu0 %vm244_vm0, %v552_v11 }
   0xf   :  { %535 = vmatprep.subr.msk.bf16.mxu1 %vm244_vm0, %v553_v13 }
  0x15   :  { %494 = vmatpush3.bf16.xpose.msra.mxu0 %v264_v16 }
  0x16   :  { %512 = vmatpush3.bf16.xpose.msra.mxu1 %v312_v18  ;;  %528 = vmatprep.subr.msk.bf16.mxu0 %vm244_vm0, %v556_v17 }
  0x17   :  { %536 = vmatprep.subr.msk.bf16.mxu1 %vm244_vm0, %v557_v19 }
  0x1d   :  { %496 = vmatpush3.bf16.xpose.msra.mxu0 %v261_v22 }
  0x1e   :  { %514 = vmatpush3.bf16.xpose.msra.mxu1 %v309_v24  ;;  %529 = vmatprep.subr.msk.bf16.mxu0 %vm244_vm0, %v560_v23 }
  0x1f   :  { %537 = vmatprep.subr.msk.bf16.mxu1 %vm244_vm0, %v561_v25 }
  0x20   :  { %7 = vsyncpa [#allocation3], 0  ;;  %v258_v29 = vsel %vm244_vm0, %v562_v26, 0  ;;  %v564_v30 = vld [vmem:[%s756_s1 + $0x50] sm:$0xff]   ;;  %505 = vmatprep.mubr.msk.bf16.mxu0 %vm244_vm0, %v576_v28  ;;  %523 = vmatprep.mubr.msk.bf16.mxu1 %vm244_vm0, %v576_v28  ;;  %v306_v31 = vsel %vm244_vm0, %v563_v27, 0  ;;  %v568_v36 = vld [vmem:[%s756_s1 + $0x48] sm:$0xff]  }
  0x21   :  { %v565_v32 = vld [vmem:[%s756_s1 + $0xd0] sm:$0xff]   ;;  %v569_v38 = vld [vmem:[%s756_s1 + $0xc8] sm:$0xff]   ;;  %v572_v42 = vld [vmem:[%s756_s1 + $0x40] sm:$0xff]   ;;  %s599_s18 = smov [#allocation2]  }
  0x22   :  { %v566_v33 = vld [vmem:[%s756_s1 + $0x10] sm:$0xff]   ;;  %v570_v39 = vld [vmem:[%s756_s1 + $0x8] sm:$0xff]   ;;  %v573_v44 = vld [vmem:[%s756_s1 + $0xc0] sm:$0xff]   ;;  %s443_s19 = sshll.u32 %s599_s18, 4  ;;  %s444_s19 = int_to_ptr.vmem [resolvable:$true] %s443_s19 }
  0x23   :  { %v567_v34 = vld [vmem:[%s756_s1 + $0x90] sm:$0xff]   ;;  %v255_v35 = vsel %vm244_vm0, %v566_v33, 0  ;;  %v571_v40 = vld [vmem:[%s756_s1 + $0x88] sm:$0xff]   ;;  %v252_v41 = vsel %vm244_vm0, %v570_v39, 0  ;;  %v574_v45 = vld [vmem:[%s756_s1] sm:$0xff]   ;;  %p582_p1 = scmp.lt.s32.totalorder %s444_s19, %s444_s19 }
  0x24   :  { %v303_v37 = vsel %vm244_vm0, %v567_v34, 0  ;;  %v300_v43 = vsel %vm244_vm0, %v571_v40, 0  ;;  %v575_v46 = vld [vmem:[%s756_s1 + $0x80] sm:$0xff]   ;;  %v249_v47 = vsel %vm244_vm0, %v574_v45, 0  ;;  %s577_s1 = scalar_lea.vmem %s444_s19, 1024 }
  0x25   :  { %498 = vmatpush3.bf16.xpose.msra.mxu0 %v258_v29  ;;  %v297_v48 = vsel %vm244_vm0, %v575_v46, 0  ;;  %p578_p0 = scmp.ne.s32.totalorder %s444_s19, %s577_s1  ;;  %p583_p2 = scmp.lt.s32.totalorder %s577_s1, %s577_s1 }
  0x26   :  { %516 = vmatpush3.bf16.xpose.msra.mxu1 %v306_v31  ;;  %530 = vmatprep.subr.msk.bf16.mxu0 %vm244_vm0, %v564_v30 }
  0x27   :  { %538 = vmatprep.subr.msk.bf16.mxu1 %vm244_vm0, %v565_v32  ;;  %p584_p3 = por %p583_p2, %p582_p1 }
  0x29   :  { %p585_p4 = pnand %p584_p3, %p578_p0 }
  0x2d   :  { %500 = vmatpush3.bf16.xpose.msra.mxu0 %v255_v35 }
  0x2e   :  { %518 = vmatpush3.bf16.xpose.msra.mxu1 %v303_v37  ;;  %531 = vmatprep.subr.msk.bf16.mxu0 %vm244_vm0, %v568_v36 }
  0x2f   :  { %539 = vmatprep.subr.msk.bf16.mxu1 %vm244_vm0, %v569_v38 }
  0x35   :  { %502 = vmatpush3.bf16.xpose.msra.mxu0 %v252_v41 }
  0x36   :  { %520 = vmatpush3.bf16.xpose.msra.mxu1 %v300_v43  ;;  %532 = vmatprep.subr.msk.bf16.mxu0 %vm244_vm0, %v572_v42 }
  0x37   :  { %540 = vmatprep.subr.msk.bf16.mxu1 %vm244_vm0, %v573_v44 }
  0x3d   :  { %504 = vmatpush3.bf16.xpose.msra.mxu0 %v249_v47 }
  0x3e   :  { %522 = vmatpush3.bf16.xpose.msra.mxu1 %v297_v48 }
  0x44   :  { %506 = vmatmul.mubr.msk.bf16.vlgmr.msra.gmra.mxu0 %vm244_vm0, %v576_v28 }
  0x45   :  { %524 = vmatmul.mubr.msk.bf16.vlgmr.msra.gmra.mxu1 %vm244_vm0, %v576_v28 }
 0x104   :  { %v378_v49 = vpop.f32.mrf.mxu0 }
 0x105   :  { %430 = vst [vmem:[#allocation2] sm:$0xff] %v378_v49  ;;  %v421_v50 = vpop.f32.mrf.mxu1 }
 0x106   :  { %432 = vst [vmem:[#allocation2 + $0x10] sm:$0xff] %v421_v50  ;;  %v380_v51 = vpop.f32.mrf.mxu0 }
 0x107   :  { %431 = vst [vmem:[#allocation2 + $0x8] sm:$0xff] %v380_v51  ;;  %v423_v52 = vpop.f32.mrf.mxu1 }
 0x108   :  { %433 = vst [vmem:[#allocation2 + $0x18] sm:$0xff] %v423_v52  ;;  %v382_v53 = vpop.f32.mrf.mxu0 }
 0x109   :  { %434 = vst [vmem:[#allocation2 + $0x20] sm:$0xff] %v382_v53  ;;  %v425_v54 = vpop.f32.mrf.mxu1 }
 0x10a   :  { %436 = vst [vmem:[#allocation2 + $0x30] sm:$0xff] %v425_v54  ;;  %v384_v55 = vpop.f32.mrf.mxu0 }
 0x10b   :  { %435 = vst [vmem:[#allocation2 + $0x28] sm:$0xff] %v384_v55  ;;  %v427_v56 = vpop.f32.mrf.mxu1 }
 0x10c   :  { %437 = vst [vmem:[#allocation2 + $0x38] sm:$0xff] %v427_v56 }
 0x10d   :  { %588 = shalt.err (!%p585_p4)
}
 0x10e   :  { %s600_s20 = smov 512   ;;  %s601_s21 = smov 32  }
 0x10f   :  { %449 = dma.vmem_to_hbm [thread:$0]  %s444_s19, 1024, %s757_s2, [#allocation3], %s600_s20, %s600_s20, %s601_s21  }
 0x110   :  { %597 = dma.done.wait [#allocation3], 1024  }
 0x111   :  { %598 = vsyncadd [#allocation3], 4294966272 }
 0x112   :  { %453 = vsyncpa [#allocation3], 1 }

</bundles_post_ra>
